<compile_context>
chip_gen: v5e
topology: v5e:2x2
jax: 0.10.0
libtpu: 0.0.40
codegen_flags: <defaults>
</compile_context>

<pallas_src>
import jax
import jax.numpy as jnp
from jax.experimental import pallas as pl
from jax.experimental.pallas import tpu as pltpu


# ----------------------------------------------------------------------------
# Single fused kernel: LSTM (last hidden state only) + advanced MLP head.
# ----------------------------------------------------------------------------
def _make_network_kernel(B, T, H):
    def kernel(x_ref, w_ih_ref, w_hh_ref, b_ref,
               w50_ref, b50_ref, w10_ref, b10_ref, wout_ref, bout_ref,
               o_ref, xp_sc):
        # (1) One MXU pass for the input projections of ALL timesteps.
        #     x_ref is (T*B, I), t-major; bias folded once (hoisted).
        xp_sc[...] = (
            jnp.dot(x_ref[...], w_ih_ref[...],
                    preferred_element_type=jnp.float32)
            + b_ref[...])                                    # (T*B, 4H)

        w_hh = w_hh_ref[...]                                 # hoisted load

        # (2) Recurrent loop, fully unrolled inside one grid point.
        #     Per step: one MXU push (h @ W_hh) + EUP transcendentals.
        def step(t, carry):
            h, c = carry
            gates = xp_sc[pl.ds(t * B, B), :] + jnp.dot(
                h, w_hh, preferred_element_type=jnp.float32)  # (B, 4H)
            i_g = jax.nn.sigmoid(gates[:, 0 * H:1 * H])
            f_g = jax.nn.sigmoid(gates[:, 1 * H:2 * H])
            g_g = jnp.tanh(gates[:, 2 * H:3 * H])
            o_g = jax.nn.sigmoid(gates[:, 3 * H:4 * H])
            c_new = f_g * c + i_g * g_g
            h_new = o_g * jnp.tanh(c_new)
            return (h_new, c_new)

        h0 = jnp.zeros((B, H), jnp.float32)
        c0 = jnp.zeros((B, H), jnp.float32)
        h, _ = jax.lax.fori_loop(0, T, step, (h0, c0), unroll=True)

        # (3) Fused MLP head: relu(linear50) -> relu(linear10) -> out_advanced.
        t1 = jnp.maximum(
            jnp.dot(h, w50_ref[...], preferred_element_type=jnp.float32)
            + b50_ref[...], 0.0)
        t2 = jnp.maximum(
            jnp.dot(t1, w10_ref[...], preferred_element_type=jnp.float32)
            + b10_ref[...], 0.0)
        o_ref[...] = (
            jnp.dot(t2, wout_ref[...], preferred_element_type=jnp.float32)
            + bout_ref[...])

    return kernel


def network_forward(x, p):
    """x: (B, T, I) batch_first (same as PyTorch). Returns (B, 3)."""
    B, T, I = x.shape
    H = p["w_hh_t"].shape[0]
    # Present x t-major and flattened so the kernel can take one big
    # (T*B, I) @ (I, 4H) matmul and slice per-timestep rows contiguously.
    x_flat = jnp.transpose(x, (1, 0, 2)).reshape(T * B, I)

    return pl.pallas_call(
        _make_network_kernel(B, T, H),
        out_shape=jax.ShapeDtypeStruct((B, 3), jnp.float32),
        scratch_shapes=[pltpu.VMEM((T * B, 4 * H), jnp.float32)],
    )(x_flat, p["w_ih_t"], p["w_hh_t"], p["b_lstm"],
      p["w50"], p["b50"], p["w10"], p["b10"], p["wout"], p["bout"])


# ----------------------------------------------------------------------------
# Parameter init (deterministic; PyTorch-style uniform ranges, not a checkpoint)
# ----------------------------------------------------------------------------
def init_params(key, input_size, hidden_size):
    ks = jax.random.split(key, 10)
    u = lambda k, shape, bound: jax.random.uniform(
        k, shape, jnp.float32, -bound, bound)

    kH = 1.0 / jnp.sqrt(hidden_size)
    return {
        # LSTM weights stored transposed: (in, 4H); gate order [i, f, g, o].
        "w_ih_t": u(ks[0], (input_size, 4 * hidden_size), kH),
        "w_hh_t": u(ks[1], (hidden_size, 4 * hidden_size), kH),
        "b_lstm": u(ks[2], (1, 4 * hidden_size), kH),      # b_ih + b_hh folded
        # linear50: hidden_size -> 50
        "w50": u(ks[3], (hidden_size, 50), 1.0 / jnp.sqrt(hidden_size)),
        "b50": u(ks[4], (1, 50), 1.0 / jnp.sqrt(hidden_size)),
        # linear10: 50 -> 10
        "w10": u(ks[5], (50, 10), 1.0 / jnp.sqrt(50.0)),
        "b10": u(ks[6], (1, 10), 1.0 / jnp.sqrt(50.0)),
        # out_advanced: 10 -> 3
        "wout": u(ks[7], (10, 3), 1.0 / jnp.sqrt(10.0)),
        "bout": u(ks[8], (1, 3), 1.0 / jnp.sqrt(10.0)),
    }


# ----------------------------------------------------------------------------
# Pure-JAX reference for validation
# ----------------------------------------------------------------------------
def network_reference(x, p):
    B, T, I = x.shape
    H = p["w_hh_t"].shape[0]

    def step(carry, x_t):
        h, c = carry
        gates = x_t @ p["w_ih_t"] + h @ p["w_hh_t"] + p["b_lstm"]
        i = jax.nn.sigmoid(gates[:, 0 * H:1 * H])
        f = jax.nn.sigmoid(gates[:, 1 * H:2 * H])
        g = jnp.tanh(gates[:, 2 * H:3 * H])
        o = jax.nn.sigmoid(gates[:, 3 * H:4 * H])
        c = f * c + i * g
        h = o * jnp.tanh(c)
        return (h, c), None

    h0 = jnp.zeros((B, H), jnp.float32)
    (h, _), _ = jax.lax.scan(step, (h0, h0), jnp.transpose(x, (1, 0, 2)))
    t = jnp.maximum(h @ p["w50"] + p["b50"], 0.0)
    t = jnp.maximum(t @ p["w10"] + p["b10"], 0.0)
    return t @ p["wout"] + p["bout"]


if __name__ == "__main__":
    B, T, I, H = 2, 8, 8, 32

    key = jax.random.PRNGKey(0)
    k_x, k_p = jax.random.split(key)
    x = jax.random.normal(k_x, (B, T, I), jnp.float32)
    params = init_params(k_p, I, H)

    out = jax.block_until_ready(network_forward(x, params))
    ref = jax.block_until_ready(network_reference(x, params))

    assert out.shape == (B, 3), out.shape
    assert jnp.allclose(out, ref, atol=1e-4, rtol=1e-4), (
        f"mismatch: max abs err = {jnp.max(jnp.abs(out - ref))}")
    print("KERNEL_OK")
</pallas_src>

<mosaic_0001>
module attributes {stable_mosaic.version = 11 : i64} {
  func.func @kernel(%arg0: memref<16x8xf32, #tpu.memory_space<vmem>>, %arg1: memref<8x128xf32, #tpu.memory_space<vmem>>, %arg2: memref<32x128xf32, #tpu.memory_space<vmem>>, %arg3: memref<1x128xf32, #tpu.memory_space<vmem>>, %arg4: memref<32x50xf32, #tpu.memory_space<vmem>>, %arg5: memref<1x50xf32, #tpu.memory_space<vmem>>, %arg6: memref<50x10xf32, #tpu.memory_space<vmem>>, %arg7: memref<1x10xf32, #tpu.memory_space<vmem>>, %arg8: memref<10x3xf32, #tpu.memory_space<vmem>>, %arg9: memref<1x3xf32, #tpu.memory_space<vmem>>, %arg10: memref<2x3xf32, #tpu.memory_space<vmem>>, %arg11: memref<16x128xf32, #tpu.memory_space<vmem>>) attributes {dimension_semantics = [], scalar_prefetch = 0 : i64, scratch_operands = 1 : i64, tpu.core_type = #tpu.core_type<tc>} {
    %c0 = arith.constant 0 : index
    %c0_0 = arith.constant 0 : index
    %0 = vector.load %arg0[%c0, %c0_0] : memref<16x8xf32, #tpu.memory_space<vmem>>, vector<16x8xf32>
    %c0_1 = arith.constant 0 : index
    %c0_2 = arith.constant 0 : index
    %1 = vector.load %arg1[%c0_1, %c0_2] : memref<8x128xf32, #tpu.memory_space<vmem>>, vector<8x128xf32>
    %cst = arith.constant dense<0.000000e+00> : vector<16x128xf32>
    %2 = tpu.matmul %0, %1, %cst {dimension_numbers = #tpu.dot_dimension_numbers<[1], [0], [0], [1], [0, 0, 1, 1], [], []>} : vector<16x8xf32>, vector<8x128xf32>, vector<16x128xf32> -> vector<16x128xf32>
    %c0_3 = arith.constant 0 : index
    %c0_4 = arith.constant 0 : index
    %3 = vector.load %arg3[%c0_3, %c0_4] : memref<1x128xf32, #tpu.memory_space<vmem>>, vector<1x128xf32>
    %4 = vector.broadcast %3 : vector<1x128xf32> to vector<16x128xf32>
    %5 = arith.addf %2, %4 : vector<16x128xf32>
    %c0_5 = arith.constant 0 : index
    %c0_6 = arith.constant 0 : index
    %6 = vector.load %arg11[%c0_5, %c0_6] : memref<16x128xf32, #tpu.memory_space<vmem>>, vector<16x128xf32>
    tpu.vector_store %arg11[%c0_5, %c0_6], %5 {strides = array<i32>} : memref<16x128xf32, #tpu.memory_space<vmem>>, vector<16x128xf32>,
    %c0_7 = arith.constant 0 : index
    %c0_8 = arith.constant 0 : index
    %7 = vector.load %arg2[%c0_7, %c0_8] : memref<32x128xf32, #tpu.memory_space<vmem>>, vector<32x128xf32>
    %cst_9 = arith.constant 0.000000e+00 : f32
    %8 = vector.broadcast %cst_9 : f32 to vector<2x32xf32>
    %cst_10 = arith.constant 0.000000e+00 : f32
    %9 = vector.broadcast %cst_10 : f32 to vector<2x32xf32>
    %c0_i32 = arith.constant 0 : i32
    %c2_i32 = arith.constant 2 : i32
    %10 = arith.muli %c0_i32, %c2_i32 : i32
    %11 = arith.index_cast %10 : i32 to index
    %c0_11 = arith.constant 0 : index
    %12 = vector.load %arg11[%11, %c0_11] : memref<16x128xf32, #tpu.memory_space<vmem>>, vector<2x128xf32>
    %cst_12 = arith.constant dense<0.000000e+00> : vector<2x128xf32>
    %13 = tpu.matmul %8, %7, %cst_12 {dimension_numbers = #tpu.dot_dimension_numbers<[1], [0], [0], [1], [0, 0, 1, 1], [], []>} : vector<2x32xf32>, vector<32x128xf32>, vector<2x128xf32> -> vector<2x128xf32>
    %14 = arith.addf %12, %13 : vector<2x128xf32>
    %15 = vector.extract_strided_slice %14 {offsets = [0, 0], sizes = [2, 32], strides = [1, 1]} : vector<2x128xf32> to vector<2x32xf32>
    %16 = arith.negf %15 : vector<2x32xf32>
    %17 = math.exp %16 : vector<2x32xf32>
    %cst_13 = arith.constant 1.000000e+00 : f32
    %18 = vector.broadcast %cst_13 : f32 to vector<2x32xf32>
    %19 = arith.addf %18, %17 : vector<2x32xf32>
    %20 = arith.divf %18, %19 : vector<2x32xf32>
    %21 = vector.extract_strided_slice %14 {offsets = [0, 32], sizes = [2, 32], strides = [1, 1]} : vector<2x128xf32> to vector<2x32xf32>
    %22 = arith.negf %21 : vector<2x32xf32>
    %23 = math.exp %22 : vector<2x32xf32>
    %cst_14 = arith.constant 1.000000e+00 : f32
    %24 = vector.broadcast %cst_14 : f32 to vector<2x32xf32>
    %25 = arith.addf %24, %23 : vector<2x32xf32>
    %26 = arith.divf %24, %25 : vector<2x32xf32>
    %27 = vector.extract_strided_slice %14 {offsets = [0, 64], sizes = [2, 32], strides = [1, 1]} : vector<2x128xf32> to vector<2x32xf32>
    %28 = math.tanh %27 : vector<2x32xf32>
    %29 = vector.extract_strided_slice %14 {offsets = [0, 96], sizes = [2, 32], strides = [1, 1]} : vector<2x128xf32> to vector<2x32xf32>
    %30 = arith.negf %29 : vector<2x32xf32>
    %31 = math.exp %30 : vector<2x32xf32>
    %cst_15 = arith.constant 1.000000e+00 : f32
    %32 = vector.broadcast %cst_15 : f32 to vector<2x32xf32>
    %33 = arith.addf %32, %31 : vector<2x32xf32>
    %34 = arith.divf %32, %33 : vector<2x32xf32>
    %35 = arith.mulf %26, %9 : vector<2x32xf32>
    %36 = arith.mulf %20, %28 : vector<2x32xf32>
    %37 = arith.addf %35, %36 : vector<2x32xf32>
    %38 = math.tanh %37 : vector<2x32xf32>
    %39 = arith.mulf %34, %38 : vector<2x32xf32>
    %c1_i32 = arith.constant 1 : i32
    %c2_i32_16 = arith.constant 2 : i32
    %40 = arith.muli %c1_i32, %c2_i32_16 : i32
    %41 = arith.index_cast %40 : i32 to index
    %c0_17 = arith.constant 0 : index
    %42 = vector.load %arg11[%41, %c0_17] : memref<16x128xf32, #tpu.memory_space<vmem>>, vector<2x128xf32>
    %cst_18 = arith.constant dense<0.000000e+00> : vector<2x128xf32>
    %43 = tpu.matmul %39, %7, %cst_18 {dimension_numbers = #tpu.dot_dimension_numbers<[1], [0], [0], [1], [0, 0, 1, 1], [], []>} : vector<2x32xf32>, vector<32x128xf32>, vector<2x128xf32> -> vector<2x128xf32>
    %44 = arith.addf %42, %43 : vector<2x128xf32>
    %45 = vector.extract_strided_slice %44 {offsets = [0, 0], sizes = [2, 32], strides = [1, 1]} : vector<2x128xf32> to vector<2x32xf32>
    %46 = arith.negf %45 : vector<2x32xf32>
    %47 = math.exp %46 : vector<2x32xf32>
    %cst_19 = arith.constant 1.000000e+00 : f32
    %48 = vector.broadcast %cst_19 : f32 to vector<2x32xf32>
    %49 = arith.addf %48, %47 : vector<2x32xf32>
    %50 = arith.divf %48, %49 : vector<2x32xf32>
    %51 = vector.extract_strided_slice %44 {offsets = [0, 32], sizes = [2, 32], strides = [1, 1]} : vector<2x128xf32> to vector<2x32xf32>
    %52 = arith.negf %51 : vector<2x32xf32>
    %53 = math.exp %52 : vector<2x32xf32>
    %cst_20 = arith.constant 1.000000e+00 : f32
    %54 = vector.broadcast %cst_20 : f32 to vector<2x32xf32>
    %55 = arith.addf %54, %53 : vector<2x32xf32>
    %56 = arith.divf %54, %55 : vector<2x32xf32>
    %57 = vector.extract_strided_slice %44 {offsets = [0, 64], sizes = [2, 32], strides = [1, 1]} : vector<2x128xf32> to vector<2x32xf32>
    %58 = math.tanh %57 : vector<2x32xf32>
    %59 = vector.extract_strided_slice %44 {offsets = [0, 96], sizes = [2, 32], strides = [1, 1]} : vector<2x128xf32> to vector<2x32xf32>
    %60 = arith.negf %59 : vector<2x32xf32>
    %61 = math.exp %60 : vector<2x32xf32>
    %cst_21 = arith.constant 1.000000e+00 : f32
    %62 = vector.broadcast %cst_21 : f32 to vector<2x32xf32>
    %63 = arith.addf %62, %61 : vector<2x32xf32>
    %64 = arith.divf %62, %63 : vector<2x32xf32>
    %65 = arith.mulf %56, %37 : vector<2x32xf32>
    %66 = arith.mulf %50, %58 : vector<2x32xf32>
    %67 = arith.addf %65, %66 : vector<2x32xf32>
    %68 = math.tanh %67 : vector<2x32xf32>
    %69 = arith.mulf %64, %68 : vector<2x32xf32>
    %c2_i32_22 = arith.constant 2 : i32
    %c2_i32_23 = arith.constant 2 : i32
    %70 = arith.muli %c2_i32_22, %c2_i32_23 : i32
    %71 = arith.index_cast %70 : i32 to index
    %c0_24 = arith.constant 0 : index
    %72 = vector.load %arg11[%71, %c0_24] : memref<16x128xf32, #tpu.memory_space<vmem>>, vector<2x128xf32>
    %cst_25 = arith.constant dense<0.000000e+00> : vector<2x128xf32>
    %73 = tpu.matmul %69, %7, %cst_25 {dimension_numbers = #tpu.dot_dimension_numbers<[1], [0], [0], [1], [0, 0, 1, 1], [], []>} : vector<2x32xf32>, vector<32x128xf32>, vector<2x128xf32> -> vector<2x128xf32>
    %74 = arith.addf %72, %73 : vector<2x128xf32>
    %75 = vector.extract_strided_slice %74 {offsets = [0, 0], sizes = [2, 32], strides = [1, 1]} : vector<2x128xf32> to vector<2x32xf32>
    %76 = arith.negf %75 : vector<2x32xf32>
    %77 = math.exp %76 : vector<2x32xf32>
    %cst_26 = arith.constant 1.000000e+00 : f32
    %78 = vector.broadcast %cst_26 : f32 to vector<2x32xf32>
    %79 = arith.addf %78, %77 : vector<2x32xf32>
    %80 = arith.divf %78, %79 : vector<2x32xf32>
    %81 = vector.extract_strided_slice %74 {offsets = [0, 32], sizes = [2, 32], strides = [1, 1]} : vector<2x128xf32> to vector<2x32xf32>
    %82 = arith.negf %81 : vector<2x32xf32>
    %83 = math.exp %82 : vector<2x32xf32>
    %cst_27 = arith.constant 1.000000e+00 : f32
    %84 = vector.broadcast %cst_27 : f32 to vector<2x32xf32>
    %85 = arith.addf %84, %83 : vector<2x32xf32>
    %86 = arith.divf %84, %85 : vector<2x32xf32>
    %87 = vector.extract_strided_slice %74 {offsets = [0, 64], sizes = [2, 32], strides = [1, 1]} : vector<2x128xf32> to vector<2x32xf32>
    %88 = math.tanh %87 : vector<2x32xf32>
    %89 = vector.extract_strided_slice %74 {offsets = [0, 96], sizes = [2, 32], strides = [1, 1]} : vector<2x128xf32> to vector<2x32xf32>
    %90 = arith.negf %89 : vector<2x32xf32>
    %91 = math.exp %90 : vector<2x32xf32>
    %cst_28 = arith.constant 1.000000e+00 : f32
    %92 = vector.broadcast %cst_28 : f32 to vector<2x32xf32>
    %93 = arith.addf %92, %91 : vector<2x32xf32>
    %94 = arith.divf %92, %93 : vector<2x32xf32>
    %95 = arith.mulf %86, %67 : vector<2x32xf32>
    %96 = arith.mulf %80, %88 : vector<2x32xf32>
    %97 = arith.addf %95, %96 : vector<2x32xf32>
    %98 = math.tanh %97 : vector<2x32xf32>
    %99 = arith.mulf %94, %98 : vector<2x32xf32>
    %c3_i32 = arith.constant 3 : i32
    %c2_i32_29 = arith.constant 2 : i32
    %100 = arith.muli %c3_i32, %c2_i32_29 : i32
    %101 = arith.index_cast %100 : i32 to index
    %c0_30 = arith.constant 0 : index
    %102 = vector.load %arg11[%101, %c0_30] : memref<16x128xf32, #tpu.memory_space<vmem>>, vector<2x128xf32>
    %cst_31 = arith.constant dense<0.000000e+00> : vector<2x128xf32>
    %103 = tpu.matmul %99, %7, %cst_31 {dimension_numbers = #tpu.dot_dimension_numbers<[1], [0], [0], [1], [0, 0, 1, 1], [], []>} : vector<2x32xf32>, vector<32x128xf32>, vector<2x128xf32> -> vector<2x128xf32>
    %104 = arith.addf %102, %103 : vector<2x128xf32>
    %105 = vector.extract_strided_slice %104 {offsets = [0, 0], sizes = [2, 32], strides = [1, 1]} : vector<2x128xf32> to vector<2x32xf32>
    %106 = arith.negf %105 : vector<2x32xf32>
    %107 = math.exp %106 : vector<2x32xf32>
    %cst_32 = arith.constant 1.000000e+00 : f32
    %108 = vector.broadcast %cst_32 : f32 to vector<2x32xf32>
    %109 = arith.addf %108, %107 : vector<2x32xf32>
    %110 = arith.divf %108, %109 : vector<2x32xf32>
    %111 = vector.extract_strided_slice %104 {offsets = [0, 32], sizes = [2, 32], strides = [1, 1]} : vector<2x128xf32> to vector<2x32xf32>
    %112 = arith.negf %111 : vector<2x32xf32>
    %113 = math.exp %112 : vector<2x32xf32>
    %cst_33 = arith.constant 1.000000e+00 : f32
    %114 = vector.broadcast %cst_33 : f32 to vector<2x32xf32>
    %115 = arith.addf %114, %113 : vector<2x32xf32>
    %116 = arith.divf %114, %115 : vector<2x32xf32>
    %117 = vector.extract_strided_slice %104 {offsets = [0, 64], sizes = [2, 32], strides = [1, 1]} : vector<2x128xf32> to vector<2x32xf32>
    %118 = math.tanh %117 : vector<2x32xf32>
    %119 = vector.extract_strided_slice %104 {offsets = [0, 96], sizes = [2, 32], strides = [1, 1]} : vector<2x128xf32> to vector<2x32xf32>
    %120 = arith.negf %119 : vector<2x32xf32>
    %121 = math.exp %120 : vector<2x32xf32>
    %cst_34 = arith.constant 1.000000e+00 : f32
    %122 = vector.broadcast %cst_34 : f32 to vector<2x32xf32>
    %123 = arith.addf %122, %121 : vector<2x32xf32>
    %124 = arith.divf %122, %123 : vector<2x32xf32>
    %125 = arith.mulf %116, %97 : vector<2x32xf32>
    %126 = arith.mulf %110, %118 : vector<2x32xf32>
    %127 = arith.addf %125, %126 : vector<2x32xf32>
    %128 = math.tanh %127 : vector<2x32xf32>
    %129 = arith.mulf %124, %128 : vector<2x32xf32>
    %c4_i32 = arith.constant 4 : i32
    %c2_i32_35 = arith.constant 2 : i32
    %130 = arith.muli %c4_i32, %c2_i32_35 : i32
    %131 = arith.index_cast %130 : i32 to index
    %c0_36 = arith.constant 0 : index
    %132 = vector.load %arg11[%131, %c0_36] : memref<16x128xf32, #tpu.memory_space<vmem>>, vector<2x128xf32>
    %cst_37 = arith.constant dense<0.000000e+00> : vector<2x128xf32>
    %133 = tpu.matmul %129, %7, %cst_37 {dimension_numbers = #tpu.dot_dimension_numbers<[1], [0], [0], [1], [0, 0, 1, 1], [], []>} : vector<2x32xf32>, vector<32x128xf32>, vector<2x128xf32> -> vector<2x128xf32>
    %134 = arith.addf %132, %133 : vector<2x128xf32>
    %135 = vector.extract_strided_slice %134 {offsets = [0, 0], sizes = [2, 32], strides = [1, 1]} : vector<2x128xf32> to vector<2x32xf32>
    %136 = arith.negf %135 : vector<2x32xf32>
    %137 = math.exp %136 : vector<2x32xf32>
    %cst_38 = arith.constant 1.000000e+00 : f32
    %138 = vector.broadcast %cst_38 : f32 to vector<2x32xf32>
    %139 = arith.addf %138, %137 : vector<2x32xf32>
    %140 = arith.divf %138, %139 : vector<2x32xf32>
    %141 = vector.extract_strided_slice %134 {offsets = [0, 32], sizes = [2, 32], strides = [1, 1]} : vector<2x128xf32> to vector<2x32xf32>
    %142 = arith.negf %141 : vector<2x32xf32>
    %143 = math.exp %142 : vector<2x32xf32>
    %cst_39 = arith.constant 1.000000e+00 : f32
    %144 = vector.broadcast %cst_39 : f32 to vector<2x32xf32>
    %145 = arith.addf %144, %143 : vector<2x32xf32>
    %146 = arith.divf %144, %145 : vector<2x32xf32>
    %147 = vector.extract_strided_slice %134 {offsets = [0, 64], sizes = [2, 32], strides = [1, 1]} : vector<2x128xf32> to vector<2x32xf32>
    %148 = math.tanh %147 : vector<2x32xf32>
    %149 = vector.extract_strided_slice %134 {offsets = [0, 96], sizes = [2, 32], strides = [1, 1]} : vector<2x128xf32> to vector<2x32xf32>
    %150 = arith.negf %149 : vector<2x32xf32>
    %151 = math.exp %150 : vector<2x32xf32>
    %cst_40 = arith.constant 1.000000e+00 : f32
    %152 = vector.broadcast %cst_40 : f32 to vector<2x32xf32>
    %153 = arith.addf %152, %151 : vector<2x32xf32>
    %154 = arith.divf %152, %153 : vector<2x32xf32>
    %155 = arith.mulf %146, %127 : vector<2x32xf32>
    %156 = arith.mulf %140, %148 : vector<2x32xf32>
    %157 = arith.addf %155, %156 : vector<2x32xf32>
    %158 = math.tanh %157 : vector<2x32xf32>
    %159 = arith.mulf %154, %158 : vector<2x32xf32>
    %c5_i32 = arith.constant 5 : i32
    %c2_i32_41 = arith.constant 2 : i32
    %160 = arith.muli %c5_i32, %c2_i32_41 : i32
    %161 = arith.index_cast %160 : i32 to index
    %c0_42 = arith.constant 0 : index
    %162 = vector.load %arg11[%161, %c0_42] : memref<16x128xf32, #tpu.memory_space<vmem>>, vector<2x128xf32>
    %cst_43 = arith.constant dense<0.000000e+00> : vector<2x128xf32>
    %163 = tpu.matmul %159, %7, %cst_43 {dimension_numbers = #tpu.dot_dimension_numbers<[1], [0], [0], [1], [0, 0, 1, 1], [], []>} : vector<2x32xf32>, vector<32x128xf32>, vector<2x128xf32> -> vector<2x128xf32>
    %164 = arith.addf %162, %163 : vector<2x128xf32>
    %165 = vector.extract_strided_slice %164 {offsets = [0, 0], sizes = [2, 32], strides = [1, 1]} : vector<2x128xf32> to vector<2x32xf32>
    %166 = arith.negf %165 : vector<2x32xf32>
    %167 = math.exp %166 : vector<2x32xf32>
    %cst_44 = arith.constant 1.000000e+00 : f32
    %168 = vector.broadcast %cst_44 : f32 to vector<2x32xf32>
    %169 = arith.addf %168, %167 : vector<2x32xf32>
    %170 = arith.divf %168, %169 : vector<2x32xf32>
    %171 = vector.extract_strided_slice %164 {offsets = [0, 32], sizes = [2, 32], strides = [1, 1]} : vector<2x128xf32> to vector<2x32xf32>
    %172 = arith.negf %171 : vector<2x32xf32>
    %173 = math.exp %172 : vector<2x32xf32>
    %cst_45 = arith.constant 1.000000e+00 : f32
    %174 = vector.broadcast %cst_45 : f32 to vector<2x32xf32>
    %175 = arith.addf %174, %173 : vector<2x32xf32>
    %176 = arith.divf %174, %175 : vector<2x32xf32>
    %177 = vector.extract_strided_slice %164 {offsets = [0, 64], sizes = [2, 32], strides = [1, 1]} : vector<2x128xf32> to vector<2x32xf32>
    %178 = math.tanh %177 : vector<2x32xf32>
    %179 = vector.extract_strided_slice %164 {offsets = [0, 96], sizes = [2, 32], strides = [1, 1]} : vector<2x128xf32> to vector<2x32xf32>
    %180 = arith.negf %179 : vector<2x32xf32>
    %181 = math.exp %180 : vector<2x32xf32>
    %cst_46 = arith.constant 1.000000e+00 : f32
    %182 = vector.broadcast %cst_46 : f32 to vector<2x32xf32>
    %183 = arith.addf %182, %181 : vector<2x32xf32>
    %184 = arith.divf %182, %183 : vector<2x32xf32>
    %185 = arith.mulf %176, %157 : vector<2x32xf32>
    %186 = arith.mulf %170, %178 : vector<2x32xf32>
    %187 = arith.addf %185, %186 : vector<2x32xf32>
    %188 = math.tanh %187 : vector<2x32xf32>
    %189 = arith.mulf %184, %188 : vector<2x32xf32>
    %c6_i32 = arith.constant 6 : i32
    %c2_i32_47 = arith.constant 2 : i32
    %190 = arith.muli %c6_i32, %c2_i32_47 : i32
    %191 = arith.index_cast %190 : i32 to index
    %c0_48 = arith.constant 0 : index
    %192 = vector.load %arg11[%191, %c0_48] : memref<16x128xf32, #tpu.memory_space<vmem>>, vector<2x128xf32>
    %cst_49 = arith.constant dense<0.000000e+00> : vector<2x128xf32>
    %193 = tpu.matmul %189, %7, %cst_49 {dimension_numbers = #tpu.dot_dimension_numbers<[1], [0], [0], [1], [0, 0, 1, 1], [], []>} : vector<2x32xf32>, vector<32x128xf32>, vector<2x128xf32> -> vector<2x128xf32>
    %194 = arith.addf %192, %193 : vector<2x128xf32>
    %195 = vector.extract_strided_slice %194 {offsets = [0, 0], sizes = [2, 32], strides = [1, 1]} : vector<2x128xf32> to vector<2x32xf32>
    %196 = arith.negf %195 : vector<2x32xf32>
    %197 = math.exp %196 : vector<2x32xf32>
    %cst_50 = arith.constant 1.000000e+00 : f32
    %198 = vector.broadcast %cst_50 : f32 to vector<2x32xf32>
    %199 = arith.addf %198, %197 : vector<2x32xf32>
    %200 = arith.divf %198, %199 : vector<2x32xf32>
    %201 = vector.extract_strided_slice %194 {offsets = [0, 32], sizes = [2, 32], strides = [1, 1]} : vector<2x128xf32> to vector<2x32xf32>
    %202 = arith.negf %201 : vector<2x32xf32>
    %203 = math.exp %202 : vector<2x32xf32>
    %cst_51 = arith.constant 1.000000e+00 : f32
    %204 = vector.broadcast %cst_51 : f32 to vector<2x32xf32>
    %205 = arith.addf %204, %203 : vector<2x32xf32>
    %206 = arith.divf %204, %205 : vector<2x32xf32>
    %207 = vector.extract_strided_slice %194 {offsets = [0, 64], sizes = [2, 32], strides = [1, 1]} : vector<2x128xf32> to vector<2x32xf32>
    %208 = math.tanh %207 : vector<2x32xf32>
    %209 = vector.extract_strided_slice %194 {offsets = [0, 96], sizes = [2, 32], strides = [1, 1]} : vector<2x128xf32> to vector<2x32xf32>
    %210 = arith.negf %209 : vector<2x32xf32>
    %211 = math.exp %210 : vector<2x32xf32>
    %cst_52 = arith.constant 1.000000e+00 : f32
    %212 = vector.broadcast %cst_52 : f32 to vector<2x32xf32>
    %213 = arith.addf %212, %211 : vector<2x32xf32>
    %214 = arith.divf %212, %213 : vector<2x32xf32>
    %215 = arith.mulf %206, %187 : vector<2x32xf32>
    %216 = arith.mulf %200, %208 : vector<2x32xf32>
    %217 = arith.addf %215, %216 : vector<2x32xf32>
    %218 = math.tanh %217 : vector<2x32xf32>
    %219 = arith.mulf %214, %218 : vector<2x32xf32>
    %c7_i32 = arith.constant 7 : i32
    %c2_i32_53 = arith.constant 2 : i32
    %220 = arith.muli %c7_i32, %c2_i32_53 : i32
    %221 = arith.index_cast %220 : i32 to index
    %c0_54 = arith.constant 0 : index
    %222 = vector.load %arg11[%221, %c0_54] : memref<16x128xf32, #tpu.memory_space<vmem>>, vector<2x128xf32>
    %cst_55 = arith.constant dense<0.000000e+00> : vector<2x128xf32>
    %223 = tpu.matmul %219, %7, %cst_55 {dimension_numbers = #tpu.dot_dimension_numbers<[1], [0], [0], [1], [0, 0, 1, 1], [], []>} : vector<2x32xf32>, vector<32x128xf32>, vector<2x128xf32> -> vector<2x128xf32>
    %224 = arith.addf %222, %223 : vector<2x128xf32>
    %225 = vector.extract_strided_slice %224 {offsets = [0, 0], sizes = [2, 32], strides = [1, 1]} : vector<2x128xf32> to vector<2x32xf32>
    %226 = arith.negf %225 : vector<2x32xf32>
    %227 = math.exp %226 : vector<2x32xf32>
    %cst_56 = arith.constant 1.000000e+00 : f32
    %228 = vector.broadcast %cst_56 : f32 to vector<2x32xf32>
    %229 = arith.addf %228, %227 : vector<2x32xf32>
    %230 = arith.divf %228, %229 : vector<2x32xf32>
    %231 = vector.extract_strided_slice %224 {offsets = [0, 32], sizes = [2, 32], strides = [1, 1]} : vector<2x128xf32> to vector<2x32xf32>
    %232 = arith.negf %231 : vector<2x32xf32>
    %233 = math.exp %232 : vector<2x32xf32>
    %cst_57 = arith.constant 1.000000e+00 : f32
    %234 = vector.broadcast %cst_57 : f32 to vector<2x32xf32>
    %235 = arith.addf %234, %233 : vector<2x32xf32>
    %236 = arith.divf %234, %235 : vector<2x32xf32>
    %237 = vector.extract_strided_slice %224 {offsets = [0, 64], sizes = [2, 32], strides = [1, 1]} : vector<2x128xf32> to vector<2x32xf32>
    %238 = math.tanh %237 : vector<2x32xf32>
    %239 = vector.extract_strided_slice %224 {offsets = [0, 96], sizes = [2, 32], strides = [1, 1]} : vector<2x128xf32> to vector<2x32xf32>
    %240 = arith.negf %239 : vector<2x32xf32>
    %241 = math.exp %240 : vector<2x32xf32>
    %cst_58 = arith.constant 1.000000e+00 : f32
    %242 = vector.broadcast %cst_58 : f32 to vector<2x32xf32>
    %243 = arith.addf %242, %241 : vector<2x32xf32>
    %244 = arith.divf %242, %243 : vector<2x32xf32>
    %245 = arith.mulf %236, %217 : vector<2x32xf32>
    %246 = arith.mulf %230, %238 : vector<2x32xf32>
    %247 = arith.addf %245, %246 : vector<2x32xf32>
    %248 = math.tanh %247 : vector<2x32xf32>
    %249 = arith.mulf %244, %248 : vector<2x32xf32>
    %c8_i32 = arith.constant 8 : i32
    %c0_59 = arith.constant 0 : index
    %c0_60 = arith.constant 0 : index
    %250 = vector.load %arg4[%c0_59, %c0_60] : memref<32x50xf32, #tpu.memory_space<vmem>>, vector<32x50xf32>
    %cst_61 = arith.constant dense<0.000000e+00> : vector<2x50xf32>
    %251 = tpu.matmul %249, %250, %cst_61 {dimension_numbers = #tpu.dot_dimension_numbers<[1], [0], [0], [1], [0, 0, 1, 1], [], []>} : vector<2x32xf32>, vector<32x50xf32>, vector<2x50xf32> -> vector<2x50xf32>
    %c0_62 = arith.constant 0 : index
    %c0_63 = arith.constant 0 : index
    %252 = vector.load %arg5[%c0_62, %c0_63] : memref<1x50xf32, #tpu.memory_space<vmem>>, vector<1x50xf32>
    %253 = vector.broadcast %252 : vector<1x50xf32> to vector<2x50xf32>
    %254 = arith.addf %251, %253 : vector<2x50xf32>
    %cst_64 = arith.constant 0.000000e+00 : f32
    %255 = vector.broadcast %cst_64 : f32 to vector<2x50xf32>
    %256 = arith.maximumf %254, %255 : vector<2x50xf32>
    %c0_65 = arith.constant 0 : index
    %c0_66 = arith.constant 0 : index
    %257 = vector.load %arg6[%c0_65, %c0_66] : memref<50x10xf32, #tpu.memory_space<vmem>>, vector<50x10xf32>
    %cst_67 = arith.constant dense<0.000000e+00> : vector<2x10xf32>
    %258 = tpu.matmul %256, %257, %cst_67 {dimension_numbers = #tpu.dot_dimension_numbers<[1], [0], [0], [1], [0, 0, 1, 1], [], []>} : vector<2x50xf32>, vector<50x10xf32>, vector<2x10xf32> -> vector<2x10xf32>
    %c0_68 = arith.constant 0 : index
    %c0_69 = arith.constant 0 : index
    %259 = vector.load %arg7[%c0_68, %c0_69] : memref<1x10xf32, #tpu.memory_space<vmem>>, vector<1x10xf32>
    %260 = vector.broadcast %259 : vector<1x10xf32> to vector<2x10xf32>
    %261 = arith.addf %258, %260 : vector<2x10xf32>
    %cst_70 = arith.constant 0.000000e+00 : f32
    %262 = vector.broadcast %cst_70 : f32 to vector<2x10xf32>
    %263 = arith.maximumf %261, %262 : vector<2x10xf32>
    %c0_71 = arith.constant 0 : index
    %c0_72 = arith.constant 0 : index
    %264 = vector.load %arg8[%c0_71, %c0_72] : memref<10x3xf32, #tpu.memory_space<vmem>>, vector<10x3xf32>
    %cst_73 = arith.constant dense<0.000000e+00> : vector<2x3xf32>
    %265 = tpu.matmul %263, %264, %cst_73 {dimension_numbers = #tpu.dot_dimension_numbers<[1], [0], [0], [1], [0, 0, 1, 1], [], []>} : vector<2x10xf32>, vector<10x3xf32>, vector<2x3xf32> -> vector<2x3xf32>
    %c0_74 = arith.constant 0 : index
    %c0_75 = arith.constant 0 : index
    %266 = vector.load %arg9[%c0_74, %c0_75] : memref<1x3xf32, #tpu.memory_space<vmem>>, vector<1x3xf32>
    %267 = vector.broadcast %266 : vector<1x3xf32> to vector<2x3xf32>
    %268 = arith.addf %265, %267 : vector<2x3xf32>
    %c0_76 = arith.constant 0 : index
    %c0_77 = arith.constant 0 : index
    %269 = vector.load %arg10[%c0_76, %c0_77] : memref<2x3xf32, #tpu.memory_space<vmem>>, vector<2x3xf32>
    tpu.vector_store %arg10[%c0_76, %c0_77], %268 {strides = array<i32>} : memref<2x3xf32, #tpu.memory_space<vmem>>, vector<2x3xf32>,
    return
  }
}

</mosaic_0001>

<bundles_post_ra>
// kernel: tpu_custom_call.1
= control target key start
LH: loop header
LB: loop body
LE: loop exit
PB: predicated region body
PF: predicated region fallthrough
CT: control target
= control target key end

     0   :  { %vm43_vm0 = vcmask 64512   ;;  %s1017_s0 = inlined_call_operand.vmem [shape: f32[16,8], index: 0, kind: input, shape index: {}]   ;;  %s1018_s1 = inlined_call_operand.vmem [shape: f32[8,128], index: 1, kind: input, shape index: {}]   ;;  %s1019_s2 = inlined_call_operand.vmem [shape: f32[32,128], index: 2, kind: input, shape index: {}]   ;;  %s1020_s3 = inlined_call_operand.vmem [shape: f32[1,128], index: 3, kind: input, shape index: {}]   ;;  %s1021_s4 = inlined_call_operand.vmem [shape: f32[32,50], index: 4, kind: input, shape index: {}]   ;;  %s1022_s5 = inlined_call_operand.vmem [shape: f32[1,50], index: 5, kind: input, shape index: {}]   ;;  %s1023_s6 = inlined_call_operand.vmem [shape: f32[50,10], index: 6, kind: input, shape index: {}]   ;;  %s1024_s7 = inlined_call_operand.vmem [shape: f32[1,10], index: 7, kind: input, shape index: {}]   ;;  %s1025_s8 = inlined_call_operand.vmem [shape: f32[10,3], index: 8, kind: input, shape index: {}]   ;;  %s1026_s9 = inlined_call_operand.vmem [shape: f32[1,3], index: 9, kind: input, shape index: {}]   ;;  %s1027_s10 = inlined_call_operand.hbm [shape: f32[2,3], index: 10, kind: output, shape index: {}]  }
   0x1   :  { %v38_v0 = vld [vmem:[%s1018_s1] sm:$0xff]  ;;  %v78_v2 = vld [vmem:[%s1019_s2 + $0x18] sm:$0xff]  ;;  %v77_v3 = vld [vmem:[%s1019_s2 + $0x10] sm:$0xff] }
   0x2   :  { %v36_v1 = vld [vmem:[%s1017_s0] sm:$0xff]  ;;  %65 = vmatpush.msra.mxu0 %v38_v0  ;;  %96 = vmatpush.msra.mxu1 %v78_v2  ;;  %v76_v4 = vld [vmem:[%s1019_s2 + $0x8] sm:$0xff] }
   0x3   :  { %715 = vmatmul.msk.f32.vlgmr.msra.gmra.mxu0 %vm43_vm0, %v36_v1  ;;  %160 = vmatpush.msra.mxu2 %v78_v2 }
   0x4   :  { %97 = vmatpush.msra.mxu1 %v77_v3  ;;  %224 = vmatpush.msra.mxu3 %v78_v2 }
   0x5   :  { %15 = vsyncpa [#allocation4], 0  ;;  %v75_v5 = vld [vmem:[%s1019_s2] sm:$0xff]  ;;  %161 = vmatpush.msra.mxu2 %v77_v3  ;;  %480 = vmatpush.msrb.mxu0 %v78_v2  ;;  %v835_v6 = vmov 0.0   ;;  %s836_s25 = smov 64   ;;  %vm80_vm5 = vcmask 261120  }
   0x6   :  { %98 = vmatpush.msra.mxu1 %v76_v4  ;;  %225 = vmatpush.msra.mxu3 %v77_v3  ;;  %v916_v7 = vld [vmem:[%s1020_s3] ss:$0 sm:$0xff]  ;;  %s837_s3 = smov 32   ;;  %s838_s12 = smov [#allocation3]  }
   0x7   :  { %162 = vmatpush.msra.mxu2 %v76_v4  ;;  %481 = vmatpush.msrb.mxu0 %v77_v3  ;;  %s704_s13 = sshll.u32 %s838_s12, 4  ;;  %s705_s13 = int_to_ptr.vmem [resolvable:$true] %s704_s13 }
   0x8   :  { %99 = vmatpush.msra.mxu1 %v75_v5  ;;  %226 = vmatpush.msra.mxu3 %v76_v4 }
   0x9   :  { %100 = vmatmul.f32.vlgmr.msra.gmra.mxu1 %v835_v6  ;;  %163 = vmatpush.msra.mxu2 %v75_v5 }
   0xa   :  { %227 = vmatpush.msra.mxu3 %v75_v5  ;;  %288 = vmatpush.msrb.mxu1 %v78_v2 }
   0xb   :  { %352 = vmatpush.msrb.mxu2 %v78_v2  ;;  %482 = vmatpush.msrb.mxu0 %v76_v4 }
   0xc   :  { %416 = vmatpush.msrb.mxu3 %v78_v2  ;;  %289 = vmatpush.msrb.mxu1 %v77_v3 }
   0xd   :  { %353 = vmatpush.msrb.mxu2 %v77_v3  ;;  %483 = vmatpush.msrb.mxu0 %v75_v5 }
   0xe   :  { %417 = vmatpush.msrb.mxu3 %v77_v3  ;;  %290 = vmatpush.msrb.mxu1 %v76_v4 }
   0xf   :  { %354 = vmatpush.msrb.mxu2 %v76_v4 }
  0x10   :  { %418 = vmatpush.msrb.mxu3 %v76_v4  ;;  %291 = vmatpush.msrb.mxu1 %v75_v5 }
  0x11   :  { %355 = vmatpush.msrb.mxu2 %v75_v5 }
  0x12   :  { %419 = vmatpush.msrb.mxu3 %v75_v5  ;;  %544 = vmatpush.msra.mxu1 %v78_v2 }
  0x14   :  { %545 = vmatpush.msra.mxu1 %v77_v3 }
  0x16   :  { %546 = vmatpush.msra.mxu1 %v76_v4 }
  0x18   :  { %547 = vmatpush.msra.mxu1 %v75_v5 }
  0x80   :  { %v67_v8 = vpop.f32.mrf.mxu0 }
  0x81   :  { %v68_v9 = vadd.f32 %v916_v7, %v67_v8 }
  0x83   :  { %73 = vst [vmem:[#allocation2] sm:$0xff] %v68_v9 }
  0x86   :  { %v101_v10 = vpop.f32.mrf.mxu1 }
  0x8a   :  { %v79_v11 = vld [vmem:[#allocation2] sm:$0x3]  ;;  %v142_v36 = vld [vmem:[#allocation2 + $0x2] sm:$0x3]  ;;  %v206_v62 = vld [vmem:[#allocation2 + $0x4] sm:$0x3] }
  0x8b   :  { %v104_v12 = vadd.f32 %v101_v10, %v79_v11 }
  0x8d   :  { %745 = vtanh.f32 %v104_v12  ;;  %v717_v14 = vmul.f32 -1.442695, %v104_v12 }
  0x8f   :  { %747 = vpow2.f32 %v717_v14 }
  0x93   :  { %v746_v13 = vpop.eup %745 }
  0x94   :  { %127 = vrot.lane.b32.xlu0 %v746_v13, %s836_s25 }
  0x95   :  { %v748_v15 = vpop.eup %747 }
  0x96   :  { %v108_v16 = vadd.f32 1.0, %v748_v15 }
  0x98   :  { %749 = vrcp.f32 %v108_v16  ;;  %v120_v22 = vand.u32 2147483648, %v108_v16  ;;  %vm114_vm2 = vweird.f32 %v108_v16  ;;  %v118_v23 = vand.u32 2147483647, %v108_v16 }
  0x9a   :  { %v121_v25 = vor.u32 1.1754944e-38, %v120_v22  ;;  %vm119_vm4 = vcmp.eq.f32.partialorder %v118_v23, 8.507059e+37 }
  0x9e   :  { %v750_v17 = vpop.eup %749 }
  0x9f   :  { %v110_v18 = vmul.f32 %v750_v17, %v108_v16  ;;  %vm115_vm1 = vweird.f32 %v750_v17 }
  0xa0   :  { %vm116_vm3 = vmor %vm114_vm2, %vm115_vm1 }
  0xa1   :  { %v111_v19 = vsub.f32 1.0, %v110_v18 }
  0xa3   :  { %v112_v20 = vmul.f32 %v750_v17, %v111_v19 }
  0xa5   :  { %v113_v21 = vadd.f32 %v750_v17, %v112_v20 }
  0xa7   :  { %v117_v24 = vsel %vm116_vm3, %v750_v17, %v113_v21 }
  0xa8   :  { %v122_v27 = vsel %vm119_vm4, %v121_v25, %v117_v24  ;;  %v270_v25 = vld [vmem:[#allocation2 + $0x6] sm:$0x3] }
  0xa9   :  { %v125_v29 = vmul.f32 0.0, %v122_v27 }
 0x106   :  { %v128_v26 = vpop.permute.xlu0 %127 }
 0x107   :  { %v130_v28 = vmul.f32 %v128_v26, %v122_v27 }
 0x109   :  { %132 = vrot.lane.b32.xlu0 %v130_v28, %s837_s3 }
 0x17b   :  { %v133_v30 = vpop.permute.xlu0 %132 }
 0x17c   :  { %v135_v31 = vadd.f32 %v133_v30, %v125_v29 }
 0x17e   :  { %751 = vtanh.f32 %v135_v31 }
 0x184   :  { %v752_v32 = vpop.eup %751 }
 0x185   :  { %138 = vrot.lane.b32.xlu1 %v752_v32, %s836_s25 }
 0x1f7   :  { %v139_v33 = vpop.permute.xlu1 %138 }
 0x1f8   :  { %v141_v34 = vmul.f32 %v139_v33, %v122_v27 }
 0x1fa   :  { %144 = vrot.lane.b32.xlu1 %v141_v34, %s837_s3 }
 0x26c   :  { %v145_v35 = vpop.permute.xlu1 %144 }
 0x26d   :  { %718 = vmatmul.msk.f32.vlgmr.msra.gmra.mxu2 %vm80_vm5, %v145_v35 }
 0x2f0   :  { %v165_v37 = vpop.f32.mrf.mxu2 }
 0x2f1   :  { %v168_v38 = vadd.f32 %v165_v37, %v142_v36 }
 0x2f3   :  { %753 = vtanh.f32 %v168_v38  ;;  %v719_v40 = vmul.f32 -1.442695, %v168_v38 }
 0x2f5   :  { %755 = vpow2.f32 %v719_v40 }
 0x2f9   :  { %v754_v39 = vpop.eup %753 }
 0x2fa   :  { %191 = vrot.lane.b32.xlu2 %v754_v39, %s836_s25 }
 0x2fb   :  { %v756_v41 = vpop.eup %755 }
 0x2fc   :  { %v172_v42 = vadd.f32 1.0, %v756_v41 }
 0x2fe   :  { %757 = vrcp.f32 %v172_v42  ;;  %v184_v48 = vand.u32 2147483648, %v172_v42  ;;  %vm178_vm7 = vweird.f32 %v172_v42  ;;  %v182_v49 = vand.u32 2147483647, %v172_v42 }
 0x300   :  { %v185_v51 = vor.u32 1.1754944e-38, %v184_v48  ;;  %vm183_vm9 = vcmp.eq.f32.partialorder %v182_v49, 8.507059e+37  ;;  %v37_v48 = vld [vmem:[%s1017_s0 + $0x8] sm:$0xff] }
 0x301   :  { %716 = vmatmul.msk.f32.gmra.mxu0 %vm43_vm0, %v37_v48 }
 0x304   :  { %v758_v43 = vpop.eup %757 }
 0x305   :  { %v174_v44 = vmul.f32 %v758_v43, %v172_v42  ;;  %vm179_vm6 = vweird.f32 %v758_v43 }
 0x306   :  { %vm180_vm8 = vmor %vm178_vm7, %vm179_vm6 }
 0x307   :  { %v175_v45 = vsub.f32 1.0, %v174_v44 }
 0x309   :  { %v176_v46 = vmul.f32 %v758_v43, %v175_v45 }
 0x30b   :  { %v177_v47 = vadd.f32 %v758_v43, %v176_v46 }
 0x30d   :  { %v181_v50 = vsel %vm180_vm8, %v758_v43, %v177_v47 }
 0x30e   :  { %v186_v53 = vsel %vm183_vm9, %v185_v51, %v181_v50 }
 0x30f   :  { %v189_v55 = vmul.f32 %v186_v53, %v135_v31 }
 0x354   :  { %v192_v52 = vpop.permute.xlu2 %191 }
 0x355   :  { %v194_v54 = vmul.f32 %v192_v52, %v186_v53 }
 0x357   :  { %196 = vrot.lane.b32.xlu2 %v194_v54, %s837_s3 }
 0x37e   :  { %v70_v51 = vpop.f32.mrf.mxu0 }
 0x37f   :  { %v71_v52 = vadd.f32 %v916_v7, %v70_v51 }
 0x381   :  { %74 = vst [vmem:[#allocation2 + $0x8] sm:$0xff] %v71_v52 }
 0x388   :  { %v334_v54 = vld [vmem:[#allocation2 + $0x8] sm:$0x3] }
 0x3b1   :  { %v197_v56 = vpop.permute.xlu2 %196 }
 0x3b2   :  { %v199_v57 = vadd.f32 %v197_v56, %v189_v55 }
 0x3b4   :  { %759 = vtanh.f32 %v199_v57 }
 0x3ba   :  { %v760_v58 = vpop.eup %759 }
 0x3bb   :  { %202 = vrot.lane.b32.xlu0 %v760_v58, %s836_s25 }
 0x42d   :  { %v203_v59 = vpop.permute.xlu0 %202 }
 0x42e   :  { %v205_v60 = vmul.f32 %v203_v59, %v186_v53 }
 0x430   :  { %208 = vrot.lane.b32.xlu1 %v205_v60, %s837_s3 }
 0x4a2   :  { %v209_v61 = vpop.permute.xlu1 %208 }
 0x4a3   :  { %720 = vmatmul.msk.f32.vlgmr.msra.gmra.mxu3 %vm80_vm5, %v209_v61 }
 0x526   :  { %v229_v63 = vpop.f32.mrf.mxu3 }
 0x527   :  { %v232_v0 = vadd.f32 %v229_v63, %v206_v62 }
 0x529   :  { %761 = vtanh.f32 %v232_v0  ;;  %v721_v2 = vmul.f32 -1.442695, %v232_v0 }
 0x52b   :  { %763 = vpow2.f32 %v721_v2 }
 0x52f   :  { %v762_v1 = vpop.eup %761 }
 0x530   :  { %255 = vrot.lane.b32.xlu2 %v762_v1, %s836_s25 }
 0x531   :  { %v764_v3 = vpop.eup %763 }
 0x532   :  { %v236_v4 = vadd.f32 1.0, %v764_v3 }
 0x534   :  { %765 = vrcp.f32 %v236_v4  ;;  %v248_v11 = vand.u32 2147483648, %v236_v4  ;;  %vm242_vm11 = vweird.f32 %v236_v4  ;;  %v246_v12 = vand.u32 2147483647, %v236_v4 }
 0x536   :  { %v249_v14 = vor.u32 1.1754944e-38, %v248_v11  ;;  %vm247_vm13 = vcmp.eq.f32.partialorder %v246_v12, 8.507059e+37 }
 0x53a   :  { %v766_v5 = vpop.eup %765 }
 0x53b   :  { %v238_v6 = vmul.f32 %v766_v5, %v236_v4  ;;  %vm243_vm10 = vweird.f32 %v766_v5 }
 0x53c   :  { %vm244_vm12 = vmor %vm242_vm11, %vm243_vm10 }
 0x53d   :  { %v239_v8 = vsub.f32 1.0, %v238_v6 }
 0x53f   :  { %v240_v9 = vmul.f32 %v766_v5, %v239_v8 }
 0x541   :  { %v241_v10 = vadd.f32 %v766_v5, %v240_v9 }
 0x543   :  { %v245_v13 = vsel %vm244_vm12, %v766_v5, %v241_v10 }
 0x544   :  { %v250_v16 = vsel %vm247_vm13, %v249_v14, %v245_v13 }
 0x545   :  { %v253_v18 = vmul.f32 %v250_v16, %v199_v57 }
 0x58a   :  { %v256_v15 = vpop.permute.xlu2 %255 }
 0x58b   :  { %v258_v17 = vmul.f32 %v256_v15, %v250_v16 }
 0x58d   :  { %260 = vrot.lane.b32.xlu0 %v258_v17, %s837_s3 }
 0x5ff   :  { %v261_v19 = vpop.permute.xlu0 %260 }
 0x600   :  { %v263_v20 = vadd.f32 %v261_v19, %v253_v18 }
 0x602   :  { %767 = vtanh.f32 %v263_v20 }
 0x608   :  { %v768_v21 = vpop.eup %767 }
 0x609   :  { %266 = vrot.lane.b32.xlu1 %v768_v21, %s836_s25 }
 0x67b   :  { %v267_v22 = vpop.permute.xlu1 %266 }
 0x67c   :  { %v269_v23 = vmul.f32 %v267_v22, %v250_v16  ;;  %v398_v16 = vld [vmem:[#allocation2 + $0xa] sm:$0x3] }
 0x67e   :  { %272 = vrot.lane.b32.xlu2 %v269_v23, %s837_s3 }
 0x6d8   :  { %v273_v24 = vpop.permute.xlu2 %272 }
 0x6d9   :  { %722 = vmatmul.msk.f32.vlgmr.msrb.gmra.mxu1 %vm80_vm5, %v273_v24 }
 0x756   :  { %v293_v26 = vpop.f32.mrf.mxu1 }
 0x757   :  { %v296_v27 = vadd.f32 %v293_v26, %v270_v25 }
 0x759   :  { %769 = vtanh.f32 %v296_v27  ;;  %v723_v29 = vmul.f32 -1.442695, %v296_v27 }
 0x75b   :  { %771 = vpow2.f32 %v723_v29 }
 0x75f   :  { %v770_v28 = vpop.eup %769 }
 0x760   :  { %319 = vrot.lane.b32.xlu0 %v770_v28, %s836_s25 }
 0x761   :  { %v772_v30 = vpop.eup %771 }
 0x762   :  { %v300_v31 = vadd.f32 1.0, %v772_v30 }
 0x764   :  { %773 = vrcp.f32 %v300_v31  ;;  %v312_v37 = vand.u32 2147483648, %v300_v31  ;;  %vm306_vm15 = vweird.f32 %v300_v31  ;;  %v310_v38 = vand.u32 2147483647, %v300_v31 }
 0x766   :  { %v313_v40 = vor.u32 1.1754944e-38, %v312_v37  ;;  %vm311_vm2 = vcmp.eq.f32.partialorder %v310_v38, 8.507059e+37 }
 0x76a   :  { %v774_v32 = vpop.eup %773 }
 0x76b   :  { %v302_v33 = vmul.f32 %v774_v32, %v300_v31  ;;  %vm307_vm14 = vweird.f32 %v774_v32 }
 0x76c   :  { %vm308_vm1 = vmor %vm306_vm15, %vm307_vm14 }
 0x76d   :  { %v303_v34 = vsub.f32 1.0, %v302_v33 }
 0x76f   :  { %v304_v35 = vmul.f32 %v774_v32, %v303_v34 }
 0x771   :  { %v305_v36 = vadd.f32 %v774_v32, %v304_v35 }
 0x773   :  { %v309_v39 = vsel %vm308_vm1, %v774_v32, %v305_v36 }
 0x774   :  { %v314_v42 = vsel %vm311_vm2, %v313_v40, %v309_v39 }
 0x775   :  { %v317_v44 = vmul.f32 %v314_v42, %v263_v20 }
 0x7d2   :  { %v320_v41 = vpop.permute.xlu0 %319 }
 0x7d3   :  { %v322_v43 = vmul.f32 %v320_v41, %v314_v42 }
 0x7d5   :  { %324 = vrot.lane.b32.xlu1 %v322_v43, %s837_s3 }
 0x847   :  { %v325_v45 = vpop.permute.xlu1 %324 }
 0x848   :  { %v327_v46 = vadd.f32 %v325_v45, %v317_v44 }
 0x84a   :  { %775 = vtanh.f32 %v327_v46 }
 0x850   :  { %v776_v47 = vpop.eup %775 }
 0x851   :  { %330 = vrot.lane.b32.xlu2 %v776_v47, %s836_s25 }
 0x8ab   :  { %v331_v49 = vpop.permute.xlu2 %330 }
 0x8ac   :  { %v333_v50 = vmul.f32 %v331_v49, %v314_v42  ;;  %v462_v42 = vld [vmem:[#allocation2 + $0xc] sm:$0x3] }
 0x8ae   :  { %336 = vrot.lane.b32.xlu0 %v333_v50, %s837_s3 }
 0x920   :  { %v337_v53 = vpop.permute.xlu0 %336 }
 0x921   :  { %724 = vmatmul.msk.f32.vlgmr.msrb.gmra.mxu2 %vm80_vm5, %v337_v53 }
 0x9a4   :  { %v357_v55 = vpop.f32.mrf.mxu2 }
 0x9a5   :  { %v360_v56 = vadd.f32 %v357_v55, %v334_v54 }
 0x9a7   :  { %777 = vtanh.f32 %v360_v56  ;;  %v725_v58 = vmul.f32 -1.442695, %v360_v56 }
 0x9a9   :  { %779 = vpow2.f32 %v725_v58 }
 0x9ad   :  { %v778_v57 = vpop.eup %777 }
 0x9ae   :  { %383 = vrot.lane.b32.xlu1 %v778_v57, %s836_s25 }
 0x9af   :  { %v780_v59 = vpop.eup %779 }
 0x9b0   :  { %v364_v60 = vadd.f32 1.0, %v780_v59 }
 0x9b2   :  { %781 = vrcp.f32 %v364_v60  ;;  %v376_v1 = vand.u32 2147483648, %v364_v60  ;;  %vm370_vm3 = vweird.f32 %v364_v60  ;;  %v374_v2 = vand.u32 2147483647, %v364_v60 }
 0x9b4   :  { %v377_v4 = vor.u32 1.1754944e-38, %v376_v1  ;;  %vm375_vm6 = vcmp.eq.f32.partialorder %v374_v2, 8.507059e+37 }
 0x9b8   :  { %v782_v61 = vpop.eup %781 }
 0x9b9   :  { %v366_v62 = vmul.f32 %v782_v61, %v364_v60  ;;  %vm371_vm0 = vweird.f32 %v782_v61 }
 0x9ba   :  { %vm372_vm4 = vmor %vm370_vm3, %vm371_vm0  ;;  %vm639_vm3 = vcmask 1041408  }
 0x9bb   :  { %v367_v63 = vsub.f32 1.0, %v366_v62 }
 0x9bd   :  { %v368_v7 = vmul.f32 %v782_v61, %v367_v63 }
 0x9bf   :  { %v369_v0 = vadd.f32 %v782_v61, %v368_v7 }
 0x9c1   :  { %v373_v3 = vsel %vm372_vm4, %v782_v61, %v369_v0  ;;  %vm670_vm4 = vcmask 80896  }
 0x9c2   :  { %v378_v6 = vsel %vm375_vm6, %v377_v4, %v373_v3  ;;  %v526_v3 = vld [vmem:[#allocation2 + $0xe] sm:$0x3]  ;;  %vm697_vm6 = vcmask 17408  }
 0x9c3   :  { %v381_v9 = vmul.f32 %v378_v6, %v327_v46 }
 0xa20   :  { %v384_v5 = vpop.permute.xlu1 %383 }
 0xa21   :  { %v386_v8 = vmul.f32 %v384_v5, %v378_v6 }
 0xa23   :  { %388 = vrot.lane.b32.xlu2 %v386_v8, %s837_s3 }
 0xa7d   :  { %v389_v10 = vpop.permute.xlu2 %388 }
 0xa7e   :  { %v391_v11 = vadd.f32 %v389_v10, %v381_v9 }
 0xa80   :  { %783 = vtanh.f32 %v391_v11 }
 0xa86   :  { %v784_v12 = vpop.eup %783 }
 0xa87   :  { %394 = vrot.lane.b32.xlu0 %v784_v12, %s836_s25 }
 0xaf9   :  { %v395_v13 = vpop.permute.xlu0 %394 }
 0xafa   :  { %v397_v14 = vmul.f32 %v395_v13, %v378_v6 }
 0xafc   :  { %400 = vrot.lane.b32.xlu1 %v397_v14, %s837_s3 }
 0xb6e   :  { %v401_v15 = vpop.permute.xlu1 %400 }
 0xb6f   :  { %726 = vmatmul.msk.f32.vlgmr.msrb.gmra.mxu3 %vm80_vm5, %v401_v15 }
 0xbf2   :  { %v421_v17 = vpop.f32.mrf.mxu3 }
 0xbf3   :  { %v424_v18 = vadd.f32 %v421_v17, %v398_v16 }
 0xbf5   :  { %785 = vtanh.f32 %v424_v18  ;;  %v727_v20 = vmul.f32 -1.442695, %v424_v18 }
 0xbf7   :  { %787 = vpow2.f32 %v727_v20 }
 0xbfb   :  { %v786_v19 = vpop.eup %785 }
 0xbfc   :  { %447 = vrot.lane.b32.xlu2 %v786_v19, %s836_s25 }
 0xbfd   :  { %v788_v21 = vpop.eup %787 }
 0xbfe   :  { %v428_v22 = vadd.f32 1.0, %v788_v21 }
 0xc00   :  { %789 = vrcp.f32 %v428_v22  ;;  %v440_v28 = vand.u32 2147483648, %v428_v22  ;;  %vm434_vm8 = vweird.f32 %v428_v22  ;;  %v438_v29 = vand.u32 2147483647, %v428_v22 }
 0xc02   :  { %v441_v31 = vor.u32 1.1754944e-38, %v440_v28  ;;  %vm439_vm10 = vcmp.eq.f32.partialorder %v438_v29, 8.507059e+37  ;;  %v592_v28 = vld [vmem:[%s1021_s4 + $0x10] sm:$0xff]  ;;  %v591_v29 = vld [vmem:[%s1021_s4 + $0x8] sm:$0xff] }
 0xc06   :  { %v790_v23 = vpop.eup %789 }
 0xc07   :  { %v430_v24 = vmul.f32 %v790_v23, %v428_v22  ;;  %vm435_vm7 = vweird.f32 %v790_v23 }
 0xc08   :  { %vm436_vm9 = vmor %vm434_vm8, %vm435_vm7 }
 0xc09   :  { %v431_v25 = vsub.f32 1.0, %v430_v24 }
 0xc0b   :  { %v432_v26 = vmul.f32 %v790_v23, %v431_v25 }
 0xc0d   :  { %v433_v27 = vadd.f32 %v790_v23, %v432_v26 }
 0xc0f   :  { %v437_v30 = vsel %vm436_vm9, %v790_v23, %v433_v27  ;;  %v593_v27 = vld [vmem:[%s1021_s4 + $0x18] sm:$0xff] }
 0xc10   :  { %v442_v33 = vsel %vm439_vm10, %v441_v31, %v437_v30  ;;  %615 = vmatpush.msra.mxu2 %v593_v27  ;;  %v590_v30 = vld [vmem:[%s1021_s4] sm:$0xff] }
 0xc11   :  { %v445_v35 = vmul.f32 %v442_v33, %v391_v11 }
 0xc12   :  { %616 = vmatpush.msra.mxu2 %v592_v28 }
 0xc14   :  { %617 = vmatpush.msra.mxu2 %v591_v29 }
 0xc16   :  { %618 = vmatpush.msra.mxu2 %v590_v30 }
 0xc56   :  { %v448_v32 = vpop.permute.xlu2 %447 }
 0xc57   :  { %v450_v34 = vmul.f32 %v448_v32, %v442_v33 }
 0xc59   :  { %452 = vrot.lane.b32.xlu0 %v450_v34, %s837_s3  ;;  %v629_v34 = vld [vmem:[%s1023_s6 + $0x28] sm:$0xff] }
 0xccb   :  { %v453_v36 = vpop.permute.xlu0 %452 }
 0xccc   :  { %v455_v37 = vadd.f32 %v453_v36, %v445_v35  ;;  %v628_v35 = vld [vmem:[%s1023_s6 + $0x20] sm:$0xff]  ;;  %v627_v36 = vld [vmem:[%s1023_s6 + $0x18] sm:$0xff] }
 0xcce   :  { %791 = vtanh.f32 %v455_v37 }
 0xcd4   :  { %v792_v38 = vpop.eup %791 }
 0xcd5   :  { %458 = vrot.lane.b32.xlu1 %v792_v38, %s836_s25  ;;  %v626_v38 = vld [vmem:[%s1023_s6 + $0x10] sm:$0xff] }
 0xd47   :  { %v459_v39 = vpop.permute.xlu1 %458 }
 0xd48   :  { %v461_v40 = vmul.f32 %v459_v39, %v442_v33  ;;  %v630_v33 = vld [vmem:[%s1023_s6 + $0x30] sm:$0x3]  ;;  %v625_v39 = vld [vmem:[%s1023_s6 + $0x8] sm:$0xff] }
 0xd49   :  { %733 = vmatpush.msk.msra.mxu3 %vm639_vm3, %v630_v33 }
 0xd4a   :  { %464 = vrot.lane.b32.xlu2 %v461_v40, %s837_s3  ;;  %v624_v40 = vld [vmem:[%s1023_s6] sm:$0xff] }
 0xd4b   :  { %653 = vmatpush.msra.mxu3 %v629_v34 }
 0xd4d   :  { %654 = vmatpush.msra.mxu3 %v628_v35 }
 0xd4f   :  { %655 = vmatpush.msra.mxu3 %v627_v36 }
 0xd51   :  { %656 = vmatpush.msra.mxu3 %v626_v38 }
 0xd53   :  { %657 = vmatpush.msra.mxu3 %v625_v39 }
 0xd55   :  { %658 = vmatpush.msra.mxu3 %v624_v40 }
 0xda4   :  { %v465_v41 = vpop.permute.xlu2 %464 }
 0xda5   :  { %728 = vmatmul.msk.f32.vlgmr.msrb.gmra.mxu0 %vm80_vm5, %v465_v41  ;;  %v665_v41 = vld [vmem:[%s1025_s8 + $0x8] sm:$0x3] }
 0xda6   :  { %735 = vmatpush.msk.msra.mxu0 %vm639_vm3, %v665_v41 }
 0xe22   :  { %v485_v43 = vpop.f32.mrf.mxu0 }
 0xe23   :  { %v488_v44 = vadd.f32 %v485_v43, %v462_v42  ;;  %v742_v42 = vld [vmem:[%s1022_s5] ss:$0 sm:$0xff] }
 0xe25   :  { %793 = vtanh.f32 %v488_v44  ;;  %v729_v46 = vmul.f32 -1.442695, %v488_v44 }
 0xe27   :  { %795 = vpow2.f32 %v729_v46  ;;  %v664_v46 = vld [vmem:[%s1025_s8] sm:$0xff]  ;;  %s706_s8 = sshll.u32 %s1027_s10, 4  ;;  %s707_s8 = int_to_ptr.hbm [resolvable:$true] %s706_s8 }
 0xe28   :  { %692 = vmatpush.msra.mxu0 %v664_v46 }
 0xe2b   :  { %v794_v45 = vpop.eup %793 }
 0xe2c   :  { %511 = vrot.lane.b32.xlu0 %v794_v45, %s836_s25 }
 0xe2d   :  { %v796_v47 = vpop.eup %795 }
 0xe2e   :  { %v492_v48 = vadd.f32 1.0, %v796_v47  ;;  %v743_v47 = vld [vmem:[%s1024_s7] ss:$0 sm:$0xff] }
 0xe30   :  { %797 = vrcp.f32 %v492_v48  ;;  %v504_v54 = vand.u32 2147483648, %v492_v48  ;;  %vm498_vm12 = vweird.f32 %v492_v48  ;;  %v502_v55 = vand.u32 2147483647, %v492_v48 }
 0xe32   :  { %v505_v57 = vor.u32 1.1754944e-38, %v504_v54  ;;  %vm503_vm14 = vcmp.eq.f32.partialorder %v502_v55, 8.507059e+37 }
 0xe36   :  { %v798_v49 = vpop.eup %797 }
 0xe37   :  { %v494_v50 = vmul.f32 %v798_v49, %v492_v48  ;;  %vm499_vm11 = vweird.f32 %v798_v49 }
 0xe38   :  { %vm500_vm13 = vmor %vm498_vm12, %vm499_vm11 }
 0xe39   :  { %v495_v51 = vsub.f32 1.0, %v494_v50 }
 0xe3b   :  { %v496_v52 = vmul.f32 %v798_v49, %v495_v51  ;;  %v744_v51 = vld [vmem:[%s1026_s9] ss:$0 sm:$0xff] }
 0xe3d   :  { %v497_v53 = vadd.f32 %v798_v49, %v496_v52 }
 0xe3f   :  { %v501_v56 = vsel %vm500_vm13, %v798_v49, %v497_v53 }
 0xe40   :  { %v506_v59 = vsel %vm503_vm14, %v505_v57, %v501_v56 }
 0xe41   :  { %v509_v61 = vmul.f32 %v506_v59, %v455_v37 }
 0xe9e   :  { %v512_v58 = vpop.permute.xlu0 %511 }
 0xe9f   :  { %v514_v60 = vmul.f32 %v512_v58, %v506_v59 }
 0xea1   :  { %516 = vrot.lane.b32.xlu1 %v514_v60, %s837_s3 }
 0xf13   :  { %v517_v62 = vpop.permute.xlu1 %516 }
 0xf14   :  { %v519_v63 = vadd.f32 %v517_v62, %v509_v61 }
 0xf16   :  { %799 = vtanh.f32 %v519_v63 }
 0xf1c   :  { %v800_v7 = vpop.eup %799 }
 0xf1d   :  { %522 = vrot.lane.b32.xlu2 %v800_v7, %s836_s25 }
 0xf77   :  { %v523_v0 = vpop.permute.xlu2 %522 }
 0xf78   :  { %v525_v1 = vmul.f32 %v523_v0, %v506_v59 }
 0xf7a   :  { %528 = vrot.lane.b32.xlu0 %v525_v1, %s837_s3 }
 0xfec   :  { %v529_v2 = vpop.permute.xlu0 %528 }
 0xfed   :  { %730 = vmatmul.msk.f32.vlgmr.msra.gmra.mxu1 %vm80_vm5, %v529_v2 }
0x106a   :  { %v549_v4 = vpop.f32.mrf.mxu1 }
0x106b   :  { %v552_v5 = vadd.f32 %v549_v4, %v526_v3 }
0x106d   :  { %801 = vtanh.f32 %v552_v5  ;;  %v731_v8 = vmul.f32 -1.442695, %v552_v5 }
0x106f   :  { %803 = vpow2.f32 %v731_v8 }
0x1073   :  { %v802_v6 = vpop.eup %801 }
0x1074   :  { %575 = vrot.lane.b32.xlu1 %v802_v6, %s836_s25 }
0x1075   :  { %v804_v9 = vpop.eup %803 }
0x1076   :  { %v556_v10 = vadd.f32 1.0, %v804_v9 }
0x1078   :  { %805 = vrcp.f32 %v556_v10  ;;  %v568_v16 = vand.u32 2147483648, %v556_v10  ;;  %vm562_vm1 = vweird.f32 %v556_v10  ;;  %v566_v17 = vand.u32 2147483647, %v556_v10 }
0x107a   :  { %v569_v19 = vor.u32 1.1754944e-38, %v568_v16  ;;  %vm567_vm0 = vcmp.eq.f32.partialorder %v566_v17, 8.507059e+37 }
0x107e   :  { %v806_v11 = vpop.eup %805 }
0x107f   :  { %v558_v12 = vmul.f32 %v806_v11, %v556_v10  ;;  %vm563_vm15 = vweird.f32 %v806_v11 }
0x1080   :  { %vm564_vm2 = vmor %vm562_vm1, %vm563_vm15 }
0x1081   :  { %v559_v13 = vsub.f32 1.0, %v558_v12 }
0x1083   :  { %v560_v14 = vmul.f32 %v806_v11, %v559_v13 }
0x1085   :  { %v561_v15 = vadd.f32 %v806_v11, %v560_v14 }
0x1087   :  { %v565_v18 = vsel %vm564_vm2, %v806_v11, %v561_v15 }
0x1088   :  { %v570_v21 = vsel %vm567_vm0, %v569_v19, %v565_v18 }
0x1089   :  { %v573_v23 = vmul.f32 %v570_v21, %v519_v63 }
0x10e6   :  { %v576_v20 = vpop.permute.xlu1 %575 }
0x10e7   :  { %v578_v22 = vmul.f32 %v576_v20, %v570_v21 }
0x10e9   :  { %580 = vrot.lane.b32.xlu2 %v578_v22, %s837_s3 }
0x1143   :  { %v581_v24 = vpop.permute.xlu2 %580 }
0x1144   :  { %v583_v25 = vadd.f32 %v581_v24, %v573_v23 }
0x1146   :  { %807 = vtanh.f32 %v583_v25 }
0x114c   :  { %v808_v26 = vpop.eup %807 }
0x114d   :  { %586 = vrot.lane.b32.xlu0 %v808_v26, %s836_s25 }
0x11bf   :  { %v587_v31 = vpop.permute.xlu0 %586 }
0x11c0   :  { %v589_v32 = vmul.f32 %v587_v31, %v570_v21 }
0x11c2   :  { %599 = vrot.lane.b32.xlu1 %v589_v32, %s837_s3 }
0x1234   :  { %v600_v37 = vpop.permute.xlu1 %599 }
0x1235   :  { %732 = vmatmul.msk.f32.vlgmr.msra.gmra.mxu2 %vm80_vm5, %v600_v37  ;;  %vm635_vm5 = vcmask 408576  }
0x12b8   :  { %v620_v43 = vpop.f32.mrf.mxu2 }
0x12b9   :  { %v621_v44 = vadd.f32 %v742_v42, %v620_v43 }
0x12bb   :  { %v623_v45 = vmax.f32 %v621_v44, 0.0 }
0x12bd   :  { %734 = vmatmul.msk.f32.vlgmr.msra.gmra.mxu3 %vm635_vm5, %v623_v45 }
0x1340   :  { %v660_v48 = vpop.f32.mrf.mxu3 }
0x1341   :  { %v661_v49 = vadd.f32 %v743_v47, %v660_v48 }
0x1343   :  { %v663_v50 = vmax.f32 %v661_v49, 0.0 }
0x1345   :  { %736 = vmatmul.msk.f32.vlgmr.msra.gmra.mxu0 %vm670_vm4, %v663_v50 }
0x13c2   :  { %v694_v52 = vpop.f32.mrf.mxu0 }
0x13c3   :  { %v695_v53 = vadd.f32 %v744_v51, %v694_v52 }
0x13c5   :  { %698 = vst.msk [vmem:[#allocation3] sm:$0x3] %vm697_vm6, %v695_v53 }
0x13c6   :  { %709 = dma.vmem_to_hbm [thread:$0]  %s705_s13, 32, %s707_s8, [#allocation4]  }
0x13c7   :  { %833 = dma.done.wait [#allocation4], 32  }
0x13c8   :  { %834 = vsyncadd [#allocation4], 4294967264 }
0x13c9   :  { %714 = vsyncpa [#allocation4], 1 }

</bundles_post_ra>
